<compile_context>
chip_gen: v6e
topology: v6e:2x2x1
jax: 0.10.0
libtpu: 0.0.40
codegen_flags: <defaults>
</compile_context>

<pallas_src>
import jax
import jax.numpy as jnp
from jax.experimental import pallas as pl
from jax.experimental.pallas import tpu as pltpu


def _round_up(x: int, m: int) -> int:
    return ((x + m - 1) // m) * m


def _round_down(x: int, m: int) -> int:
    return (x // m) * m


def combine_kernel(u_ref, i_ref, s_ref, w_ref, b_ref, o_ref):
    # u_ref, i_ref, s_ref: (TB, L); w_ref: (L, L) (already W^T); b_ref: (1, L);
    # o_ref: (TB, 3L).
    L = u_ref.shape[-1]
    u = u_ref[...]

    # Linear layer on the MXU with f32 accumulation.
    gate = jnp.dot(u, w_ref[...], preferred_element_type=jnp.float32)
    gate = gate + b_ref[...].astype(jnp.float32)

    # gate * sup in the I/O dtype (exact for f32; keeps bf16 passthrough narrow).
    latent_us = (gate.astype(s_ref.dtype) * s_ref[...]).astype(o_ref.dtype)
    u_out = u.astype(o_ref.dtype)           # no-op cast when dtypes already match
    i_out = i_ref[...].astype(o_ref.dtype)

    if L % 128 == 0:
        # Lane-aligned pieces: three contiguous unmasked slab stores, no (TB,3L)
        # concat temporary / XLU lane packing.
        o_ref[:, 0:L] = u_out
        o_ref[:, L:2 * L] = i_out
        o_ref[:, 2 * L:3 * L] = latent_us
    else:
        # Misaligned L (e.g. L=32 -> 96-lane rows): assemble the output tile once
        # and do a single block store.
        o_ref[...] = jnp.concatenate([u_out, i_out, latent_us], axis=1)


def _pick_batch_tile(B, L, in_bytes, out_bytes, w_bytes_total, budget_bytes):
    # Bytes of pipelined I/O per output row: 3 inputs (width L) + 1 output (width
    # 3L), each double-buffered.
    per_row = 2 * (3 * L * in_bytes + 3 * L * out_bytes)
    avail = max(budget_bytes - 2 * w_bytes_total, 8 * per_row)
    tb = min(avail // per_row, 8192)  # beyond ~8k rows: deep in diminishing returns
    # Keep >= 2 grid steps so ("parallel",) can shard across v7x's two TensorCores.
    tb = min(tb, max(8, _round_up(pl.cdiv(B, 2), 8)))
    # No point exceeding the (sublane-rounded) batch.
    tb = min(tb, _round_up(B, 8))
    return max(8, _round_down(tb, 8))


def combine_layer(user_latent, item_latent, sup_latent, w_t, bias, *,
                  tb: int | None = None, vmem_budget_bytes: int = 24 << 20):
    """user/item/sup: (B, L); w_t: (L, L) = W^T; bias: (L,) -> (B, 3L)."""
    B, L = user_latent.shape
    out_dtype = user_latent.dtype
    in_bytes = jnp.dtype(user_latent.dtype).itemsize
    out_bytes = jnp.dtype(out_dtype).itemsize
    w_bytes_total = (L * L + L) * jnp.dtype(w_t.dtype).itemsize

    if tb is None:
        TB = _pick_batch_tile(B, L, in_bytes, out_bytes, w_bytes_total,
                              vmem_budget_bytes)
    else:
        # Clamp user-supplied tile: multiple of 8 (sublane rule), within the batch.
        TB = max(8, _round_down(min(tb, _round_up(B, 8)), 8))

    grid = (pl.cdiv(B, TB),)  # ragged last tile handled in-kernel (no pad copies)

    b2d = bias.reshape(1, L)

    # Double-buffered tile I/O + resident W^T/bias + in-kernel f32 temporaries.
    vmem_need = (2 * TB * (3 * L * in_bytes + 3 * L * out_bytes)
                 + 2 * w_bytes_total
                 + TB * 4 * L * 4)
    vmem_limit = int(min(48 << 20, max(int(1.5 * vmem_need), 16 << 20)))

    out = pl.pallas_call(
        combine_kernel,
        out_shape=jax.ShapeDtypeStruct((B, 3 * L), out_dtype),
        grid=grid,
        in_specs=[
            pl.BlockSpec((TB, L), lambda i: (i, 0)),   # user
            pl.BlockSpec((TB, L), lambda i: (i, 0)),   # item
            pl.BlockSpec((TB, L), lambda i: (i, 0)),   # sup
            pl.BlockSpec((L, L), lambda i: (0, 0)),    # W^T, resident across steps
            pl.BlockSpec((1, L), lambda i: (0, 0)),    # bias, resident across steps
        ],
        out_specs=pl.BlockSpec((TB, 3 * L), lambda i: (i, 0)),
        compiler_params=pltpu.CompilerParams(
            dimension_semantics=("parallel",),
            vmem_limit_bytes=vmem_limit,
        ),
        cost_estimate=pl.CostEstimate(
            flops=2 * B * L * L,
            transcendentals=0,
            bytes_accessed=3 * B * L * in_bytes + B * 3 * L * out_bytes
                           + w_bytes_total,
        ),
    )(user_latent, item_latent, sup_latent, w_t, b2d)
    return out


if __name__ == "__main__":
    # Small shapes consistent with the module: batch=8, latent_factors=32.
    B, L = 8, 32
    key = jax.random.PRNGKey(0)
    k_u, k_i, k_s, k_w, k_b = jax.random.split(key, 5)

    user_latent = jax.random.normal(k_u, (B, L), dtype=jnp.float32)
    item_latent = jax.random.normal(k_i, (B, L), dtype=jnp.float32)
    sup_latent = jax.random.normal(k_s, (B, L), dtype=jnp.float32)

    # Deterministic parameters (W is (out, in) like torch.nn.Linear).
    W = jax.random.normal(k_w, (L, L), dtype=jnp.float32) * 0.1
    b = jax.random.normal(k_b, (L,), dtype=jnp.float32) * 0.1

    out = jax.block_until_ready(combine_layer(user_latent, item_latent, sup_latent, W.T, b))
    ref = jnp.concatenate(
        [user_latent, item_latent, (user_latent @ W.T + b) * sup_latent], axis=1)
    assert out.shape == (B, 3 * L)
    assert jnp.allclose(out, ref, atol=1e-5, rtol=1e-5)

    # Ragged batch (B not a multiple of the tile): exercises the masked last tile
    # with no host-side pad / slice copies.
    B2 = 20
    k_u2, k_i2, k_s2 = jax.random.split(jax.random.PRNGKey(1), 3)
    u2 = jax.random.normal(k_u2, (B2, L), dtype=jnp.float32)
    i2 = jax.random.normal(k_i2, (B2, L), dtype=jnp.float32)
    s2 = jax.random.normal(k_s2, (B2, L), dtype=jnp.float32)
    out2 = jax.block_until_ready(combine_layer(u2, i2, s2, W.T, b, tb=8))
    ref2 = jnp.concatenate([u2, i2, (u2 @ W.T + b) * s2], axis=1)
    assert out2.shape == (B2, 3 * L)
    assert jnp.allclose(out2, ref2, atol=1e-5, rtol=1e-5)

    # Lane-aligned latent dim (L % 128 == 0): exercises the direct slab-store path
    # and a multi-step ("parallel") batch grid.
    B3, L3 = 16, 128
    ks = jax.random.split(jax.random.PRNGKey(2), 5)
    u3 = jax.random.normal(ks[0], (B3, L3), dtype=jnp.float32)
    i3 = jax.random.normal(ks[1], (B3, L3), dtype=jnp.float32)
    s3 = jax.random.normal(ks[2], (B3, L3), dtype=jnp.float32)
    W3 = jax.random.normal(ks[3], (L3, L3), dtype=jnp.float32) * 0.05
    b3 = jax.random.normal(ks[4], (L3,), dtype=jnp.float32) * 0.05
    out3 = jax.block_until_ready(combine_layer(u3, i3, s3, W3.T, b3))
    ref3 = jnp.concatenate([u3, i3, (u3 @ W3.T + b3) * s3], axis=1)
    assert out3.shape == (B3, 3 * L3)
    assert jnp.allclose(out3, ref3, atol=1e-2, rtol=1e-2)

    print("KERNEL_OK")
</pallas_src>

<mosaic_0001>
module attributes {stable_mosaic.version = 11 : i64} {
  func.func @combine_kernel(%arg0: i32, %arg1: memref<8x32xf32, #tpu.memory_space<vmem>>, %arg2: memref<8x32xf32, #tpu.memory_space<vmem>>, %arg3: memref<8x32xf32, #tpu.memory_space<vmem>>, %arg4: memref<32x32xf32, #tpu.memory_space<vmem>>, %arg5: memref<1x32xf32, #tpu.memory_space<vmem>>, %arg6: memref<8x96xf32, #tpu.memory_space<vmem>>) attributes {dimension_semantics = [#tpu.dimension_semantics<parallel>], iteration_bounds = array<i64: 1>, scalar_prefetch = 0 : i64, scratch_operands = 0 : i64, tpu.core_type = #tpu.core_type<tc>, window_params = [{transform_indices = @transform_0, window_bounds = array<i64: 8, 32>}, {transform_indices = @transform_1, window_bounds = array<i64: 8, 32>}, {transform_indices = @transform_2, window_bounds = array<i64: 8, 32>}, {pipeline_mode = #tpu.pipeline_mode<synchronous>, transform_indices = @transform_3, window_bounds = array<i64: 32, 32>}, {pipeline_mode = #tpu.pipeline_mode<synchronous>, transform_indices = @transform_4, window_bounds = array<i64: 1, 32>}, {transform_indices = @transform_5, window_bounds = array<i64: 8, 96>}]} {
    %c0 = arith.constant 0 : index
    %c0_0 = arith.constant 0 : index
    %0 = vector.load %arg1[%c0, %c0_0] : memref<8x32xf32, #tpu.memory_space<vmem>>, vector<8x32xf32>
    %c0_1 = arith.constant 0 : index
    %c0_2 = arith.constant 0 : index
    %1 = vector.load %arg4[%c0_1, %c0_2] : memref<32x32xf32, #tpu.memory_space<vmem>>, vector<32x32xf32>
    %cst = arith.constant dense<0.000000e+00> : vector<8x32xf32>
    %2 = tpu.matmul %0, %1, %cst {dimension_numbers = #tpu.dot_dimension_numbers<[1], [0], [0], [1], [0, 0, 1, 1], [], []>} : vector<8x32xf32>, vector<32x32xf32>, vector<8x32xf32> -> vector<8x32xf32>
    %c0_3 = arith.constant 0 : index
    %c0_4 = arith.constant 0 : index
    %3 = vector.load %arg5[%c0_3, %c0_4] : memref<1x32xf32, #tpu.memory_space<vmem>>, vector<1x32xf32>
    %4 = vector.broadcast %3 : vector<1x32xf32> to vector<8x32xf32>
    %5 = arith.addf %2, %4 : vector<8x32xf32>
    %c0_5 = arith.constant 0 : index
    %c0_6 = arith.constant 0 : index
    %6 = vector.load %arg3[%c0_5, %c0_6] : memref<8x32xf32, #tpu.memory_space<vmem>>, vector<8x32xf32>
    %7 = arith.mulf %5, %6 : vector<8x32xf32>
    %c0_7 = arith.constant 0 : index
    %c0_8 = arith.constant 0 : index
    %8 = vector.load %arg2[%c0_7, %c0_8] : memref<8x32xf32, #tpu.memory_space<vmem>>, vector<8x32xf32>
    %9 = tpu.concatenate %0, %8, %7 in 1 : vector<8x32xf32>, vector<8x32xf32>, vector<8x32xf32> -> vector<8x96xf32>
    %c0_9 = arith.constant 0 : index
    %c0_10 = arith.constant 0 : index
    %10 = vector.load %arg6[%c0_9, %c0_10] : memref<8x96xf32, #tpu.memory_space<vmem>>, vector<8x96xf32>
    tpu.vector_store %arg6[%c0_9, %c0_10], %9 {strides = array<i32>} : memref<8x96xf32, #tpu.memory_space<vmem>>, vector<8x96xf32>,
    return
  }
  func.func @transform_0(%arg0: i32) -> (i32, i32) {
    %c0_i32 = arith.constant 0 : i32
    %c0_i32_0 = arith.constant 0 : i32
    return %arg0, %c0_i32 : i32, i32
  }
  func.func @transform_1(%arg0: i32) -> (i32, i32) {
    %c0_i32 = arith.constant 0 : i32
    %c0_i32_0 = arith.constant 0 : i32
    return %arg0, %c0_i32 : i32, i32
  }
  func.func @transform_2(%arg0: i32) -> (i32, i32) {
    %c0_i32 = arith.constant 0 : i32
    %c0_i32_0 = arith.constant 0 : i32
    return %arg0, %c0_i32 : i32, i32
  }
  func.func @transform_3(%arg0: i32) -> (i32, i32) {
    %c0_i32 = arith.constant 0 : i32
    %c0_i32_0 = arith.constant 0 : i32
    %c0_i32_1 = arith.constant 0 : i32
    return %c0_i32, %c0_i32_0 : i32, i32
  }
  func.func @transform_4(%arg0: i32) -> (i32, i32) {
    %c0_i32 = arith.constant 0 : i32
    %c0_i32_0 = arith.constant 0 : i32
    %c0_i32_1 = arith.constant 0 : i32
    return %c0_i32, %c0_i32_0 : i32, i32
  }
  func.func @transform_5(%arg0: i32) -> (i32, i32) {
    %c0_i32 = arith.constant 0 : i32
    %c0_i32_0 = arith.constant 0 : i32
    return %arg0, %c0_i32 : i32, i32
  }
}

</mosaic_0001>

<bundles_post_ra>
// kernel: tpu_custom_call.1
= control target key start
LH: loop header
LB: loop body
LE: loop exit
PB: predicated region body
PF: predicated region fallthrough
CT: control target
= control target key end

     0   :  { %10 = vsyncpa [#allocation3], 0  ;;  %s387_s0 = inlined_call_operand.hbm [shape: f32[8,32], index: 0, kind: input, shape index: {}]   ;;  %s388_s1 = inlined_call_operand.hbm [shape: f32[8,32], index: 1, kind: input, shape index: {}]   ;;  %s389_s2 = inlined_call_operand.hbm [shape: f32[8,32], index: 2, kind: input, shape index: {}]   ;;  %s390_s3 = inlined_call_operand.hbm [shape: f32[32,32], index: 3, kind: input, shape index: {}]   ;;  %s391_s4 = inlined_call_operand.vmem [shape: f32[1,32], index: 4, kind: input, shape index: {}]   ;;  %s392_s5 = inlined_call_operand.hbm [shape: f32[8,96], index: 5, kind: output, shape index: {}]  }
   0x1   :  { %11 = vsyncpa [#allocation6], 0 }
   0x2   :  { %12 = vsyncpa [#allocation9], 0 }
   0x3   :  { %13 = vsyncpa [#allocation4], 0  ;;  %s326_s18 = smov [#allocation5]   ;;  %s327_s20 = smov [#allocation2]  }
   0x4   :  { %s30_s19 = sshll.u32 %s326_s18, 4  ;;  %s20_s21 = sshll.u32 %s327_s20, 4  ;;  %s31_s19 = int_to_ptr.vmem [resolvable:$true] %s30_s19  ;;  %s21_s21 = int_to_ptr.vmem [resolvable:$true] %s20_s21 }
   0x5   :  { %s226_s22 = scalar_lea.vmem %s31_s19, 128  ;;  %p231_p1 = scmp.lt.s32.totalorder %s31_s19, %s31_s19 }
   0x6   :  { %p227_p0 = scmp.ne.s32.totalorder %s31_s19, %s226_s22  ;;  %p232_p2 = scmp.lt.s32.totalorder %s226_s22, %s226_s22 }
   0x8   :  { %p233_p3 = por %p232_p2, %p231_p1 }
   0xa   :  { %p234_p4 = pnand %p233_p3, %p227_p0 }
   0xc   :  { %237 = shalt.err (!%p234_p4)
}
   0xd   :  { %33 = dma.hbm_to_vmem [thread:$0]  %s388_s1, 128, %s31_s19, [#allocation6]  }
   0xe   :  { %s246_s25 = scalar_lea.vmem %s21_s21, 128  ;;  %p251_p6 = scmp.lt.s32.totalorder %s21_s21, %s21_s21 }
   0xf   :  { %p247_p5 = scmp.ne.s32.totalorder %s21_s21, %s246_s25  ;;  %p252_p7 = scmp.lt.s32.totalorder %s246_s25, %s246_s25 }
  0x11   :  { %p253_p8 = por %p252_p7, %p251_p6 }
  0x13   :  { %p254_p9 = pnand %p253_p8, %p247_p5 }
  0x15   :  { %257 = shalt.err (!%p254_p9)
}
  0x16   :  { %23 = dma.hbm_to_vmem [thread:$0]  %s387_s0, 128, %s21_s21, [#allocation3]  }
  0x17   :  { %s328_s28 = smov [#allocation7]   ;;  %s329_s30 = smov [#allocation8]  }
  0x18   :  { %s40_s29 = sshll.u32 %s328_s28, 4  ;;  %s49_s6 = sshll.u32 %s329_s30, 4  ;;  %s41_s29 = int_to_ptr.vmem [resolvable:$true] %s40_s29  ;;  %s50_s6 = int_to_ptr.vmem [resolvable:$true] %s49_s6 }
  0x19   :  { %s266_s7 = scalar_lea.vmem %s41_s29, 128  ;;  %p271_p11 = scmp.lt.s32.totalorder %s41_s29, %s41_s29 }
  0x1a   :  { %p267_p10 = scmp.ne.s32.totalorder %s41_s29, %s266_s7  ;;  %p272_p12 = scmp.lt.s32.totalorder %s266_s7, %s266_s7 }
  0x1c   :  { %p273_p13 = por %p272_p12, %p271_p11 }
  0x1e   :  { %p274_p0 = pnand %p273_p13, %p267_p10 }
  0x20   :  { %277 = shalt.err (!%p274_p0)
}
  0x21   :  { %43 = dma.hbm_to_vmem [thread:$0]  %s389_s2, 128, %s41_s29, [#allocation6]  }
  0x22   :  { %s286_s9 = scalar_lea.vmem %s50_s6, 512  ;;  %p291_p2 = scmp.lt.s32.totalorder %s50_s6, %s50_s6 }
  0x23   :  { %p287_p1 = scmp.ne.s32.totalorder %s50_s6, %s286_s9  ;;  %p292_p3 = scmp.lt.s32.totalorder %s286_s9, %s286_s9 }
  0x25   :  { %p293_p4 = por %p292_p3, %p291_p2 }
  0x27   :  { %p294_p5 = pnand %p293_p4, %p287_p1 }
  0x29   :  { %297 = shalt.err (!%p294_p5)
}
  0x2a   :  { %s330_s0 = smov 128   ;;  %s331_s10 = smov 8  }
  0x2b   :  { %55 = dma.hbm_to_vmem [thread:$0]  %s390_s3, 512, %s50_s6, [#allocation9], %s330_s0, %s330_s0, %s331_s10  }
  0x2c   :  { %318 = dma.done.wait [#allocation3], 128  }
  0x2d   :  { %319 = vsyncadd [#allocation3], 4294967168 }
  0x2e   :  { %320 = dma.done.wait [#allocation6], 256  }
  0x2f   :  { %321 = vsyncadd [#allocation6], 4294967040 }
  0x30   :  { %322 = dma.done.wait [#allocation9], 512  }
  0x31   :  { %323 = vsyncadd [#allocation9], 4294966784  ;;  %v332_v0 = vmov 0.0   ;;  %vm333_vm0 = vmmov 0   ;;  %v74_v1 = vld [vmem:[#allocation8 + $0x18] sm:$0xff]  ;;  %v73_v2 = vld [vmem:[#allocation8 + $0x10] sm:$0xff] }
  0x32   :  { %196 = vmatprep.subr.mxu0 %v332_v0  ;;  %204 = vmatprep.mubr.msk.f32.mxu0 %vm333_vm0, %v332_v0  ;;  %v72_v3 = vld [vmem:[#allocation8 + $0x8] sm:$0xff]  ;;  %v71_v4 = vld [vmem:[#allocation8] sm:$0xff]  ;;  %vm82_vm1 = vcmask 261120   ;;  %v158_v6 = vld [vmem:[#allocation5] sm:$0xff]  ;;  %s334_s2 = smov 32   ;;  %s335_s14 = smov 64  }
  0x33   :  { %197 = vmatpush3.msra.mxu0 %v74_v1  ;;  %v70_v5 = vld [vmem:[#allocation2] sm:$0xff]  ;;  %160 = vrot.lane.b32.xlu0 %v158_v6, %s334_s2  ;;  %v156_v9 = vld [vmem:[#allocation7] sm:$0xff]  ;;  %s336_s15 = smov [#allocation10]   ;;  %vm168_vm2 = vcmask 523264   ;;  %vm170_vm3 = vcmask 785408  }
  0x34   :  { %198 = vmatprep.subr.mxu0 %v332_v0  ;;  %v189_v7 = vld [vmem:[%s391_s4] ss:$0 sm:$0xff]  ;;  %s178_s16 = sshll.u32 %s336_s15, 4  ;;  %s179_s16 = int_to_ptr.vmem [resolvable:$true] %s178_s16 }
  0x35   :  { %199 = vmatpush3.msra.mxu0 %v73_v2  ;;  %s298_s17 = scalar_lea.vmem %s179_s16, 128  ;;  %p303_p7 = scmp.lt.s32.totalorder %s179_s16, %s179_s16 }
  0x36   :  { %200 = vmatprep.subr.mxu0 %v332_v0  ;;  %p299_p6 = scmp.ne.s32.totalorder %s179_s16, %s298_s17  ;;  %p304_p8 = scmp.lt.s32.totalorder %s298_s17, %s298_s17 }
  0x37   :  { %201 = vmatpush3.msra.mxu0 %v72_v3 }
  0x38   :  { %202 = vmatprep.subr.mxu0 %v332_v0  ;;  %p305_p9 = por %p304_p8, %p303_p7 }
  0x39   :  { %203 = vmatpush3.msra.mxu0 %v71_v4 }
  0x3a   :  { %205 = vmatmul.mubr.msk.f32.vlgmr.msra.gmra.mxu0 %vm82_vm1, %v70_v5  ;;  %p306_p10 = pnand %p305_p9, %p299_p6 }
  0xa5   :  { %v161_v13 = vpop.permute.xlu0 %160 }
  0xa6   :  { %v167_v14 = vsel %vm82_vm1, %v70_v5, %v161_v13 }
  0xfa   :  { %v152_v8 = vpop.f32.mrf.mxu0 }
  0xfb   :  { %v153_v10 = vadd.f32 %v189_v7, %v152_v8 }
  0xfc   :  { %v206_v11 = vpop.f32.mrf.mxu0 }
  0xfd   :  { %v157_v12 = vmul.f32 %v156_v9, %v153_v10 }
  0xff   :  { %164 = vrot.lane.b32.xlu0 %v157_v12, %s335_s14 }
 0x171   :  { %v165_v15 = vpop.permute.xlu0 %164 }
 0x172   :  { %v169_v16 = vsel %vm168_vm2, %v167_v14, %v165_v15 }
 0x173   :  { %171 = vst.msk [vmem:[#allocation10] sm:$0xff] %vm170_vm3, %v169_v16 }
 0x174   :  { %309 = shalt.err (!%p306_p10)
}
 0x175   :  { %181 = dma.vmem_to_hbm [thread:$0]  %s179_s16, 128, %s392_s5, [#allocation4]  }
 0x176   :  { %324 = dma.done.wait [#allocation4], 128  }
 0x177   :  { %325 = vsyncadd [#allocation4], 4294967168 }
 0x178   :  { %185 = vsyncpa [#allocation3], 1 }
 0x179   :  { %186 = vsyncpa [#allocation6], 1 }
 0x17a   :  { %187 = vsyncpa [#allocation9], 1 }
 0x17b   :  { %188 = vsyncpa [#allocation4], 1 }

</bundles_post_ra>
